<compile_context>
chip_gen: v5e
topology: v5e:2x2
jax: 0.10.0
libtpu: 0.0.40
codegen_flags: <defaults>
</compile_context>

<pallas_src>
import jax
import jax.numpy as jnp
from jax.experimental import pallas as pl
from jax.experimental.pallas import tpu as pltpu


# ---------------------------------------------------------------------------
# Tuning constants.
# ---------------------------------------------------------------------------
_TARGET_STEP_X_BYTES = 4 << 20    # ~4 MiB of x HBM traffic per grid step
_VMEM_PIPELINE_BUDGET = 32 << 20  # budget for double-buffered blocks + weight
_VMEM_LIMIT_BYTES = 48 << 20      # < v7x 64 MiB physical; << v5e/v6e 128 MiB


def _round_up(n, m):
    return ((n + m - 1) // m) * m


def _round_down(n, m):
    return (n // m) * m


def _choose_batch_tile(batch, d):
    """Byte-targeted batch tile (multiple of 8) with a VMEM-aware cap."""
    d_lanes = _round_up(d, 128)          # x block pads its lane dim to 128 in VMEM
    x_row_vmem = 4 * d_lanes             # bytes per x row in VMEM
    o_row_vmem = 4 * 128                 # (tb, 1) out block pads to 128 lanes
    w_vmem = 2 * 4 * d * 128             # (d, 128) weight, double-buffered

    # ~4 MiB of real x bytes per step to amortize the ~0.35 us step overhead.
    tb = max(8, _round_down(_TARGET_STEP_X_BYTES // (4 * d), 8))

    # Keep double-buffered x + out blocks plus the resident weight inside the
    # VMEM budget (safe on v5e/v6e 128 MiB and v7x 64 MiB).
    tb_vmem = (_VMEM_PIPELINE_BUDGET - w_vmem) // (2 * (x_row_vmem + o_row_vmem))
    tb = min(tb, max(8, _round_down(tb_vmem, 8)))

    # Never exceed the batch: only the final block is (possibly) partial.
    tb = min(tb, max(8, _round_down(batch, 8)))

    # Whole batch in one step but large enough to matter: split in two so the
    # "parallel" batch axis can shard across v7x's 2 TensorCores.
    if batch <= tb and 4 * batch * d >= (2 << 20):
        tb = max(8, _round_up((batch + 1) // 2, 8))
    return tb


def _linear_kernel(x_ref, w_ref, b_ref, o_ref):
    """y = x @ W.T + b for one batch tile.

    x_ref: (TB, D) VMEM     w_ref: (D, 128) VMEM, real weight in column 0
    b_ref: (1,)    SMEM     o_ref: (TB, 1)
    """
    # MXU matmul: the reduction over D uses the vector-extended/MXU slot
    # (idle otherwise) instead of an XLU cross-lane reduce, so it hides
    # under the x DMA.  f32 accumulation, full-precision multiplies.
    acc = jnp.dot(x_ref[...], w_ref[...],
                  preferred_element_type=jnp.float32,
                  precision=jax.lax.Precision.HIGHEST)      # (TB, 128)
    o_ref[...] = (acc[:, 0:1] + b_ref[0]).astype(o_ref.dtype)


def regressor_forward(x, weight, bias):
    """nn.Linear(D, 1) forward: returns x @ weight.T + bias with shape (B, 1).

    x:      (B, D) float32
    weight: (1, D) float32  (PyTorch nn.Linear layout)
    bias:   (1,)   float32
    """
    orig_b, d = x.shape

    # Tiny-batch guard only: keep every block <= the array extent. This pad
    # copies at most 7 rows (negligible), unlike the old full-batch pad.
    b = orig_b
    if b < 8:
        x = jnp.pad(x, ((0, 8 - b), (0, 0)))
        b = 8

    # Weight as a lane-dense (D, 128) MXU operand (real data in column 0);
    # bias as an SMEM scalar.
    w_pad = jnp.pad(weight.astype(jnp.float32).reshape(d, 1),
                    ((0, 0), (0, 127))).astype(x.dtype)
    b_vec = bias.astype(jnp.float32).reshape(1)

    tb = _choose_batch_tile(b, d)
    grid = (pl.cdiv(b, tb),)   # ragged tail handled by a partial last block
    # TODO(synk): for extremely large D (weight/x blocks no longer fit VMEM at
    # tb=8) add a second "arbitrary" grid axis over D with a VMEM accumulator.

    out = pl.pallas_call(
        _linear_kernel,
        out_shape=jax.ShapeDtypeStruct((b, 1), x.dtype),
        grid=grid,
        in_specs=[
            pl.BlockSpec((tb, d), lambda i: (i, 0)),             # x, pipelined
            pl.BlockSpec((d, 128), lambda i: (0, 0)),            # weight, resident
            pl.BlockSpec(memory_space=pltpu.MemorySpace.SMEM),   # bias scalar
        ],
        out_specs=pl.BlockSpec((tb, 1), lambda i: (i, 0)),
        compiler_params=pltpu.CompilerParams(
            # Independent batch tiles -> megacore / 2-TC sharding on v7x.
            dimension_semantics=("parallel",),
            vmem_limit_bytes=_VMEM_LIMIT_BYTES,
        ),
        cost_estimate=pl.CostEstimate(
            flops=2 * b * d,
            transcendentals=0,
            bytes_accessed=4 * (b * d + d * 128 + b),
        ),
    )(x, w_pad, b_vec)

    return out[:orig_b]


if __name__ == "__main__":
    key = jax.random.PRNGKey(0)
    kx, kw, kb = jax.random.split(key, 3)

    batch = 10          # matches the PyTorch training batch_size
    input_size = 32

    # Parameter init mirroring nn.Linear's uniform(-1/sqrt(D), 1/sqrt(D)).
    bound = 1.0 / (input_size ** 0.5)
    weight = jax.random.uniform(kw, (1, input_size), jnp.float32, -bound, bound)
    bias = jax.random.uniform(kb, (1,), jnp.float32, -bound, bound)

    def reference(xv):
        # High-precision reference (avoid XLA's default bf16 f32-matmul pass).
        return jnp.dot(xv, weight.T, precision=jax.lax.Precision.HIGHEST) + bias

    x = jax.random.normal(kx, (batch, input_size), jnp.float32)
    out = jax.block_until_ready(regressor_forward(x, weight, bias))
    assert out.shape == (batch, 1)
    assert jnp.allclose(out, reference(x), atol=1e-4, rtol=1e-4)

    # Exercise a multi-step grid with a partial last block (B not a tile multiple).
    x2 = jax.random.normal(kx, (70, input_size), jnp.float32)
    out2 = jax.block_until_ready(regressor_forward(x2, weight, bias))
    assert out2.shape == (70, 1)
    assert jnp.allclose(out2, reference(x2), atol=1e-4, rtol=1e-4)

    print("KERNEL_OK")
</pallas_src>

<mosaic_0001>
module attributes {stable_mosaic.version = 11 : i64} {
  func.func @_linear_kernel(%arg0: i32, %arg1: memref<8x32xf32, #tpu.memory_space<vmem>>, %arg2: memref<32x128xf32, #tpu.memory_space<vmem>>, %arg3: memref<1xf32, #tpu.memory_space<smem>>, %arg4: memref<8x1xf32, #tpu.memory_space<vmem>>) attributes {dimension_semantics = [#tpu.dimension_semantics<parallel>], iteration_bounds = array<i64: 2>, scalar_prefetch = 0 : i64, scratch_operands = 0 : i64, tpu.core_type = #tpu.core_type<tc>, window_params = [{transform_indices = @transform_0, window_bounds = array<i64: 8, 32>}, {pipeline_mode = #tpu.pipeline_mode<synchronous>, transform_indices = @transform_1, window_bounds = array<i64: 32, 128>}, {transform_indices = @transform_2, window_bounds = array<i64: 1>}, {transform_indices = @transform_3, window_bounds = array<i64: 8, 1>}]} {
    %c0 = arith.constant 0 : index
    %c0_0 = arith.constant 0 : index
    %0 = vector.load %arg1[%c0, %c0_0] : memref<8x32xf32, #tpu.memory_space<vmem>>, vector<8x32xf32>
    %c0_1 = arith.constant 0 : index
    %c0_2 = arith.constant 0 : index
    %1 = vector.load %arg2[%c0_1, %c0_2] : memref<32x128xf32, #tpu.memory_space<vmem>>, vector<32x128xf32>
    %cst = arith.constant dense<0.000000e+00> : vector<8x128xf32>
    %2 = tpu.matmul %0, %1, %cst {dimension_numbers = #tpu.dot_dimension_numbers<[1], [0], [0], [1], [0, 0, 1, 1], [], []>, precision = #tpu.contract_precision<fp32>} : vector<8x32xf32>, vector<32x128xf32>, vector<8x128xf32> -> vector<8x128xf32>
    %3 = vector.extract_strided_slice %2 {offsets = [0, 0], sizes = [8, 1], strides = [1, 1]} : vector<8x128xf32> to vector<8x1xf32>
    %c0_3 = arith.constant 0 : index
    %4 = memref.load %arg3[%c0_3] : memref<1xf32, #tpu.memory_space<smem>>
    %5 = vector.broadcast %4 : f32 to vector<8x1xf32>
    %6 = arith.addf %3, %5 : vector<8x1xf32>
    %c0_4 = arith.constant 0 : index
    %c0_5 = arith.constant 0 : index
    %7 = vector.load %arg4[%c0_4, %c0_5] : memref<8x1xf32, #tpu.memory_space<vmem>>, vector<8x1xf32>
    tpu.vector_store %arg4[%c0_4, %c0_5], %6 {strides = array<i32>} : memref<8x1xf32, #tpu.memory_space<vmem>>, vector<8x1xf32>,
    return
  }
  func.func @transform_0(%arg0: i32) -> (i32, i32) {
    %c0_i32 = arith.constant 0 : i32
    %c0_i32_0 = arith.constant 0 : i32
    return %arg0, %c0_i32 : i32, i32
  }
  func.func @transform_1(%arg0: i32) -> (i32, i32) {
    %c0_i32 = arith.constant 0 : i32
    %c0_i32_0 = arith.constant 0 : i32
    %c0_i32_1 = arith.constant 0 : i32
    return %c0_i32, %c0_i32_0 : i32, i32
  }
  func.func @transform_2(%arg0: i32) -> i32 {
    %c0_i32 = arith.constant 0 : i32
    %c0_i32_0 = arith.constant 0 : i32
    return %c0_i32 : i32
  }
  func.func @transform_3(%arg0: i32) -> (i32, i32) {
    %c0_i32 = arith.constant 0 : i32
    %c0_i32_0 = arith.constant 0 : i32
    return %arg0, %c0_i32 : i32, i32
  }
}

</mosaic_0001>

<bundles_post_ra>
// kernel: tpu_custom_call.1
= control target key start
LH: loop header
LB: loop body
LE: loop exit
PB: predicated region body
PF: predicated region fallthrough
CT: control target
= control target key end

     0   :  { %s773_s0 = inlined_call_operand.hbm [shape: f32[10,32], index: 0, kind: input, shape index: {}]   ;;  %s774_s1 = inlined_call_operand.hbm [shape: f32[32,128], index: 1, kind: input, shape index: {}]   ;;  %s775_s2 = inlined_call_operand.<no memory space> [shape: f32[1], index: 2, kind: input, shape index: {}]   ;;  %s776_s3 = inlined_call_operand.vmem [shape: f32[10,1], index: 3, kind: output, shape index: {}]  }
   0x1   :  { %8 = sst [smem:[#allocation2]] %s775_s2 }
   0x2   :  { %9 = vsyncpa [#allocation4], 0 }
   0x3   :  { %11 = vsyncpa [#allocation4 + $0x1], 0 }
   0x4   :  { %12 = vsyncpa [#allocation6], 0  ;;  %s670_s14 = smov 0   ;;  %s672_s15 = smov 0  }
   0x5   :  { %s674_s16 = smov 0   ;;  %s676_s17 = smov 0  }
   0x6 LB: > { %s128_s19 = sshll.u32 %s774_s1, 4  ;;  %s692_s20 = sadd.s32 4294967295, %s642_s17   ;;  %s642_s17 = sphi %s676_s17, %s783_s17   ;;  %s638_s16 = sphi %s674_s16, %s782_s16   ;;  %s634_s15 = sphi %s672_s15, %s781_s15   ;;  %s630_s14 = sphi %s670_s14, %s780_s14   ;;  %s129_s19 = int_to_ptr.hbm [resolvable:$true] %s128_s19 }
   0x7   : > { %p481_p0 = scmp.ge.s32.totalorder %s642_s17, 1  ;;  %p39_p1 = scmp.eq.s32.totalorder %s692_s20, 0 }
   0x8   : > { %p117_p2 = scmp.lt.s32.totalorder %s642_s17, 3  ;;  %s644_s22 = smov [#allocation5]  }
   0x9   : > { %s130_s23 = sshll.u32 %s644_s22, 4  ;;  %s645_s24 = smov 128   ;;  %s131_s23 = int_to_ptr.vmem [resolvable:$true] %s130_s23 }
   0xa   : > { %p697_p3 = pnand %p481_p0, %p117_p2  ;;  %s646_s25 = smov 8  }
   0xb   : > { %s706_s26 = sadd.s32 1, %s642_s17   ;;  %s25_s28 = sadd.s32 1, %s638_s16 }
   0xc   : > { %p498_p4 = pneg %p697_p3  ;;  %s22_s27 = ssub.s32 %s642_s17, %s706_s26 }
   0xd   : > { %p23_p6 = scmp.eq.s32.totalorder %s22_s27, 0  ;;  %p32_p7 = scmp.ne.s32.totalorder %s638_s16, %s634_s15 }
   0xe   : > { %p499_p5 = pnand %p498_p4, %p39_p1  ;;  %p33_p8 = scmp.eq.s32.totalorder %s642_s17, 0 }
   0xf   : > { %p38_p9 = scmp.ne.s32.totalorder %s634_s15, %s630_s14  ;;  %p507_p12 = scmp.lt.s32.totalorder %s642_s17, 2 }
  0x10   : > { %501 = dma.hbm_to_vmem [thread:$0]  (!%p499_p5), %s129_s19, 512, %s131_s23, [#allocation6], %s645_s24, %s645_s24, %s646_s25  }
  0x11   : > { %s716_s29 = scalar_select %p23_p6, %s638_s16, %s25_s28  }
  0x12   : > { %p34_p10 = por %p33_p8, %p32_p7  ;;  %p720_p11 = por %p39_p1, %p38_p9 }
  0x13   : > { %s147_s4 = sand.u32 1, %s638_s16   ;;  %s485_s6 = sshll.u32 %s642_s17, 3 }
  0x14   : > { %s484_s5 = sshll.u32 %s147_s4, 3  ;;  %s155_s9 = scalar_lea.hbm %s773_s0, %s485_s6 }
  0x15   : > { %s151_s10 = scalar_lea.vmem [#allocation3], %s484_s5  ;;  %s157_s12 = sshll.u32 %s155_s9, 4  ;;  %s158_s12 = int_to_ptr.hbm [resolvable:$true] %s157_s12 }
  0x16   : > { %s159_s11 = sshll.u32 %s151_s10, 4  ;;  %p730_p13 = pnand %p507_p12, %p34_p10  ;;  %s160_s11 = int_to_ptr.vmem [resolvable:$true] %s159_s11 }
  0x17   : > { %s148_s14 = scalar_lea.sflag [#allocation4], %s147_s4  ;;  %s574_s2 = sshra.s32 %s158_s12, 4  ;;  %s575_s2 = int_to_ptr.hbm [resolvable:$true] %s574_s2 }
  0x18   : > { %s576_s18 = scalar_lea.hbm %s575_s2, 8  ;;  %p578_p2 = pneg %p730_p13 }
  0x19   : > { %p577_p0 = scmp.ne.s32.totalorder %s575_s2, %s576_s18  ;;  %s581_s22 = scalar_lea.hbm %s773_s0, 16 }
  0x1a   : > { %p582_p6 = scmp.lt.s32.totalorder %s575_s2, %s773_s0  ;;  %p583_p7 = scmp.lt.s32.totalorder %s581_s22, %s576_s18 }
  0x1b   : > { %p579_p4 = pnand %p578_p2, %p577_p0 }
  0x1c   : > { %p584_p8 = por %p583_p7, %p582_p6 }
  0x1d   : > { %p580_p5 = pneg %p579_p4 }
  0x1f   : > { %p585_p9 = pnand %p584_p8, %p580_p5 }
  0x21   : > { %588 = shalt.err (!%p585_p9)
}
  0x22   : > { %505 = dma.hbm_to_vmem [thread:$0]  (!%p730_p13), %s158_s12, 128, %s160_s11, %s148_s14  }
  0x23   : > { %168 = sbr.rel (%p697_p3) target bundleno = 200 (0xc8), region = 32  ;;  %s170_s25 = sand.u32 (!%p697_p3), 1, %s634_s15  }
  0x24   : > { %s487_s27 = sshll.u32 (!%p697_p3), %s170_s25, 3  ;;  %s171_s28 = scalar_lea.sflag (!%p697_p3), [#allocation4], %s170_s25 }
  0x25   : > { %s174_s4 = scalar_lea.vmem (!%p697_p3), [#allocation3], %s487_s27 }
  0x28   : > { %621 = dma.done.wait (%p720_p11), %s171_s28, 128  }
  0x29   : > { %623 = vsyncadd (%p720_p11), %s171_s28, 4294967168 }
  0x2a   : > { %625 = dma.done.wait (%p39_p1), [#allocation6], 512  }
  0x2b   : > { %627 = vsyncadd (%p39_p1), [#allocation6], 4294966784  ;;  %vm211_vm0 = vcmask 261120   ;;  %v210_v0 = vld [vmem:[#allocation5 + $0x18] sm:$0xff]  ;;  %v209_v1 = vld [vmem:[#allocation5 + $0x10] sm:$0xff]  ;;  %p202_p1 = scmp.lt.s32.totalorder %s692_s20, 1 }
  0x2c   : > { %v208_v2 = vld [vmem:[#allocation5 + $0x8] sm:$0xff]  ;;  %v227_v3 = vand.u32 4294901760, %v210_v0  ;;  %v229_v4 = vand.u32 4294901760, %v209_v1  ;;  %v207_v6 = vld [vmem:[#allocation5] sm:$0xff]  ;;  %v206_v7 = vld [vmem:[%s174_s4] sm:$0xff]  ;;  %s400_s21 = sld [smem:[#allocation2]] }
  0x2d   : > { %v231_v5 = vand.u32 4294901760, %v208_v2  ;;  %v233_v8 = vand.u32 4294901760, %v207_v6  ;;  %v213_v9 = vsel %vm211_vm0, %v206_v7, 0  ;;  %s785_s20 = smov (!%p202_p1, %s692_s20), 1  ;;  %vm403_vm1 = vcmask 7168  }
  0x2e   : > { %v257_v10 = vsub.f32 %v210_v0, %v227_v3  ;;  %228 = vmatpush.msra.mxu0 %v227_v3  ;;  %v263_v11 = vsub.f32 %v209_v1, %v229_v4  ;;  %328 = vmatpush.msra.mxu3 %v227_v3  ;;  %v235_v13 = vand.u32 4294901760, %v213_v9  ;;  %s489_s30 = sshll.u32 %s785_s20, 3 }
  0x2f   : > { %v269_v12 = vsub.f32 %v208_v2, %v231_v5  ;;  %v275_v14 = vsub.f32 %v207_v6, %v233_v8  ;;  %s205_s7 = scalar_lea.vmem %s776_s3, %s489_s30 }
  0x30   : > { %299 = vmatpush.msra.mxu2 %v257_v10  ;;  %230 = vmatpush.msra.mxu0 %v229_v4  ;;  %v258_v15 = vand.u32 4294901760, %v257_v10  ;;  %v264_v16 = vand.u32 4294901760, %v263_v11  ;;  %v236_v17 = vsub.f32 %v213_v9, %v235_v13 }
  0x31   : > { %v270_v18 = vand.u32 4294901760, %v269_v12  ;;  %330 = vmatpush.msra.mxu3 %v229_v4  ;;  %v276_v19 = vand.u32 4294901760, %v275_v14 }
  0x32   : > { %302 = vmatpush.msra.mxu2 %v263_v11  ;;  %v259_v20 = vsub.f32 %v257_v10, %v258_v15  ;;  %232 = vmatpush.msra.mxu0 %v231_v5  ;;  %v265_v21 = vsub.f32 %v263_v11, %v264_v16  ;;  %v237_v23 = vand.u32 4294901760, %v236_v17  ;;  %v401_v41 = vstv %s400_s21 }
  0x33   : > { %v271_v22 = vsub.f32 %v269_v12, %v270_v18  ;;  %332 = vmatpush.msra.mxu3 %v231_v5  ;;  %v277_v27 = vsub.f32 %v275_v14, %v276_v19 }
  0x34   : > { %v260_v24 = vand.u32 4294901760, %v259_v20  ;;  %305 = vmatpush.msra.mxu2 %v269_v12  ;;  %v266_v25 = vand.u32 4294901760, %v265_v21  ;;  %234 = vmatpush.msra.mxu0 %v233_v8  ;;  %v238_v26 = vsub.f32 %v236_v17, %v237_v23 }
  0x35   : > { %334 = vmatpush.msra.mxu3 %v233_v8  ;;  %v272_v28 = vand.u32 4294901760, %v271_v22  ;;  %v278_v30 = vand.u32 4294901760, %v277_v27 }
  0x36   : > { %357 = vmatpush.msrb.mxu0 %v258_v15  ;;  %261 = vmatpush.msra.mxu1 %v260_v24  ;;  %v239_v29 = vand.u32 4294901760, %v238_v26 }
  0x37   : > { %308 = vmatpush.msra.mxu2 %v275_v14  ;;  %338 = vmatmul.f32.vlgmr.msra.gmra.mxu3 %v237_v23 }
  0x38   : > { %311 = vmatmul.f32.vlgmr.msra.gmra.mxu2 %v236_v17  ;;  %267 = vmatpush.msra.mxu1 %v266_v25 }
  0x39   : > { %240 = vmatmul.f32.vlgmr.msra.gmra.mxu0 %v239_v29 }
  0x3a   : > { %361 = vmatpush.msrb.mxu0 %v264_v16  ;;  %273 = vmatpush.msra.mxu1 %v272_v28 }
  0x3c   : > { %365 = vmatpush.msrb.mxu0 %v270_v18  ;;  %279 = vmatpush.msra.mxu1 %v278_v30 }
  0x3d   : > { %281 = vmatmul.f32.vlgmr.msra.gmra.mxu1 %v235_v13 }
  0x3e   : > { %369 = vmatpush.msrb.mxu0 %v276_v19  ;;  %388 = vmatpush.msrb.mxu1 %v227_v3 }
  0x40   : > { %390 = vmatpush.msrb.mxu1 %v229_v4 }
  0x41   : > { %371 = vmatmul.f32.vlgmr.msrb.gmra.mxu0 %v235_v13 }
  0x42   : > { %392 = vmatpush.msrb.mxu1 %v231_v5 }
  0x44   : > { %394 = vmatpush.msrb.mxu1 %v233_v8 }
  0x45   : > { %396 = vmatmul.f32.vlgmr.msrb.gmra.mxu1 %v235_v13 }
  0xb6   : > { %v241_v31 = vpop.f32.mrf.mxu0 }
  0xba   : > { %v282_v32 = vpop.f32.mrf.mxu1  ;;  %v339_v35 = vpop.f32.mrf.mxu3 }
  0xbb   : > { %v312_v33 = vpop.f32.mrf.mxu2  ;;  %v283_v34 = vadd.f32 %v282_v32, %v241_v31 }
  0xbd   : > { %v313_v36 = vadd.f32 %v312_v33, %v283_v34 }
  0xbe   : > { %v372_v37 = vpop.f32.mrf.mxu0 }
  0xbf   : > { %v340_v38 = vadd.f32 %v339_v35, %v313_v36 }
  0xc1   : > { %v373_v39 = vadd.f32 %v372_v37, %v340_v38 }
  0xc2   : > { %v397_v40 = vpop.f32.mrf.mxu1 }
  0xc3   : > { %v398_v42 = vadd.f32 %v397_v40, %v373_v39 }
  0xc5   : > { %v402_v43 = vadd.f32 %v401_v41, %v398_v42 }
  0xc7   : > { %404 = vst.msk [vmem:[%s205_s7] sm:$0xff] %vm403_vm1, %v402_v43 }
  0xc8 PF: > { %p15_p3 = scmp.ge.s32.totalorder %s706_s26, 4   ;;  %s780_s14 = smov %s634_s15 }
  0xc9   : > { %s781_s15 = smov %s638_s16  ;;  %s782_s16 = smov %s716_s29 }
  0xca   : > { %s783_s17 = smov %s706_s26  ;;  %17 = sbr.rel (!%p15_p3) target bundleno = 6 (0x6), region = 76 }
  0xcf   :  { %424 = vsyncpa [#allocation4], 1 }
  0xd0   :  { %426 = vsyncpa [#allocation4 + $0x1], 1 }
  0xd1   :  { %427 = vsyncpa [#allocation6], 1 }

</bundles_post_ra>
